<compile_context>
chip_gen: v7x
topology: tpu7x:2x2x1
jax: 0.10.0
libtpu: 0.0.40
codegen_flags: <defaults>
</compile_context>

<pallas_src>
import math
import functools

import jax
import jax.numpy as jnp
from jax.experimental import pallas as pl
from jax.experimental.pallas import tpu as pltpu

HIDDEN = 768
HEADS = 12
HEAD_DIM = HIDDEN // HEADS              # 64
FFN = 3072
LAYERS = 2                              # reduced from 12 for a small runnable example
VOCAB = 1024
MAX_POS = 64                            # sequence length is limited to 64 (synthetic model)

GROUPS = 2                              # attention head groups (one per v7x TensorCore)
HEADS_PER_GROUP = HEADS // GROUPS       # 6
GROUP_WIDTH = HEADS_PER_GROUP * HEAD_DIM  # 384
QKV_GROUP = 3 * GROUP_WIDTH             # 1152  ([Q | K | V] slab per group)


def _vmem_limit_bytes():
    """Generation-aware VMEM budget with headroom (48 MiB on v7x, 96 MiB on v5e/v6e)."""
    try:
        cap = pltpu.get_tpu_info().vmem_capacity_bytes
    except Exception:
        cap = 64 * 1024 * 1024
    return int(min(cap * 3 // 4, 96 * 1024 * 1024))


VMEM_LIMIT = _vmem_limit_bytes()


def _pick_row_tile(m, preferred=256):
    """Largest row tile that divides m; clamped to >=16 rows (bf16 packs 16 sublanes/vreg)."""
    for t in (preferred, 128, 64, 32, 16):
        if t <= m and m % t == 0:
            return t
    return m   # tiny M (<16): single padded block, negligible at these sizes


def _pick_col_tile(n, m_blocks):
    """Full-width output tiles when the row grid already has >=2 blocks (weights read
    once); otherwise split columns in half so v7x's two TensorCores both get work."""
    if m_blocks >= 2:
        return n
    half = n // 2
    if half >= 128 and half % 128 == 0 and n % half == 0:
        return half
    return n


# ----------------------------------------------------------------------------
# Kernel 1: fused linear (matmul + bias [+ exact erf-GELU]).
# ----------------------------------------------------------------------------
def _linear_kernel(x_ref, w_ref, b_ref, o_ref, *, activation):
    acc = jnp.dot(x_ref[...], w_ref[...], preferred_element_type=jnp.float32)
    acc = acc + b_ref[...]
    if activation == "gelu":
        acc = 0.5 * acc * (1.0 + jax.lax.erf(acc * 0.7071067811865476))
    o_ref[...] = acc.astype(o_ref.dtype)


def linear_pallas(x, w, b, activation=None, out_dtype=jnp.bfloat16):
    M, K = x.shape
    K2, N = w.shape
    assert K == K2
    tm = _pick_row_tile(M)
    m_blocks = M // tm
    tn = _pick_col_tile(N, m_blocks)
    n_blocks = N // tn
    kernel = functools.partial(_linear_kernel, activation=activation)

    # Pick the grid order that re-reads the smaller operand: with cols outer the
    # weight block is resident per column sweep (x re-read); with rows outer the
    # x block is resident per row sweep (w re-read).
    cols_outer = w.nbytes * (m_blocks - 1) > x.nbytes * (n_blocks - 1)
    if cols_outer:
        grid = (n_blocks, m_blocks)
        in_specs = [pl.BlockSpec((tm, K), lambda j, i: (i, 0)),
                    pl.BlockSpec((K, tn), lambda j, i: (0, j)),
                    pl.BlockSpec((1, tn), lambda j, i: (0, j))]
        out_specs = pl.BlockSpec((tm, tn), lambda j, i: (i, j))
    else:
        grid = (m_blocks, n_blocks)
        in_specs = [pl.BlockSpec((tm, K), lambda i, j: (i, 0)),
                    pl.BlockSpec((K, tn), lambda i, j: (0, j)),
                    pl.BlockSpec((1, tn), lambda i, j: (0, j))]
        out_specs = pl.BlockSpec((tm, tn), lambda i, j: (i, j))

    return pl.pallas_call(
        kernel,
        out_shape=jax.ShapeDtypeStruct((M, N), out_dtype),
        grid_spec=pltpu.PrefetchScalarGridSpec(
            num_scalar_prefetch=0,
            grid=grid,
            in_specs=in_specs,
            out_specs=out_specs,
        ),
        compiler_params=pltpu.CompilerParams(
            dimension_semantics=("parallel", "parallel"),
            vmem_limit_bytes=VMEM_LIMIT),
    )(x, w, b.reshape(1, N))


# ----------------------------------------------------------------------------
# Kernel 2: linear + bias + residual-add + LayerNorm fused in the epilogue.
# Output tile holds the full hidden dim (N=768) so LN reduces over the lane axis
# on the f32 accumulator before the single bf16 store.
# ----------------------------------------------------------------------------
def _linear_residual_ln_kernel(x_ref, w_ref, b_ref, r_ref, g_ref, bb_ref, o_ref):
    acc = jnp.dot(x_ref[...], w_ref[...], preferred_element_type=jnp.float32)
    acc = acc + b_ref[...] + r_ref[...].astype(jnp.float32)
    mean = jnp.mean(acc, axis=-1, keepdims=True)
    xc = acc - mean
    var = jnp.mean(xc * xc, axis=-1, keepdims=True)
    inv = jax.lax.rsqrt(var + 1e-12)
    o_ref[...] = (xc * inv * g_ref[...] + bb_ref[...]).astype(o_ref.dtype)


def linear_residual_ln_pallas(x, w, b, residual, gamma, beta):
    M, K = x.shape
    K2, N = w.shape
    assert K == K2
    tm = _pick_row_tile(M)
    return pl.pallas_call(
        _linear_residual_ln_kernel,
        out_shape=jax.ShapeDtypeStruct((M, N), jnp.bfloat16),
        grid_spec=pltpu.PrefetchScalarGridSpec(
            num_scalar_prefetch=0,
            grid=(M // tm,),            # >=2 row blocks at real inference shapes (B*S >= 512)
            in_specs=[
                pl.BlockSpec((tm, K), lambda i: (i, 0)),
                pl.BlockSpec((K, N), lambda i: (0, 0)),   # weight block constant -> DMA'd once
                pl.BlockSpec((1, N), lambda i: (0, 0)),
                pl.BlockSpec((tm, N), lambda i: (i, 0)),
                pl.BlockSpec((1, N), lambda i: (0, 0)),
                pl.BlockSpec((1, N), lambda i: (0, 0)),
            ],
            out_specs=pl.BlockSpec((tm, N), lambda i: (i, 0)),
        ),
        compiler_params=pltpu.CompilerParams(
            dimension_semantics=("parallel",),
            vmem_limit_bytes=VMEM_LIMIT),
    )(x, w, b.reshape(1, N), residual, gamma.reshape(1, N), beta.reshape(1, N))


# ----------------------------------------------------------------------------
# Kernel 3: multi-head attention, one head-group (6 heads) of one batch element
# per grid step.  Reads the head-group-major QKV slab (S, 1152) = [Q|K|V] for
# this group; heads processed in 128-lane pairs (aligned slices, per-pair store).
# Softmax scale is already folded into W_q.
# ----------------------------------------------------------------------------
def _attention_kernel(qkv_ref, bias_ref, o_ref):
    bias = bias_ref[...]                               # (1, S) f32 additive mask
    for p in range(HEADS_PER_GROUP // 2):              # 3 head pairs, static unroll
        lo = p * 2 * HEAD_DIM                          # 128-lane aligned offsets
        q_pair = qkv_ref[0, :, lo:lo + 2 * HEAD_DIM]
        k_pair = qkv_ref[0, :, GROUP_WIDTH + lo:GROUP_WIDTH + lo + 2 * HEAD_DIM]
        v_pair = qkv_ref[0, :, 2 * GROUP_WIDTH + lo:2 * GROUP_WIDTH + lo + 2 * HEAD_DIM]
        outs = []
        for h in range(2):                             # 64-wide sub-slices of the resident pair
            q = q_pair[:, h * HEAD_DIM:(h + 1) * HEAD_DIM]
            k = k_pair[:, h * HEAD_DIM:(h + 1) * HEAD_DIM]
            v = v_pair[:, h * HEAD_DIM:(h + 1) * HEAD_DIM]
            # TODO(synk): could emit K already transposed from the QKV projection to
            # skip the per-head transpose feeding q @ k^T.
            s = jax.lax.dot_general(                   # q @ k^T -> (S, S), f32 acc
                q, k, (((1,), (1,)), ((), ())), preferred_element_type=jnp.float32)
            s = s + bias                               # scale already folded into W_q
            s = s - jnp.max(s, axis=-1, keepdims=True)
            e = jnp.exp(s)
            pnorm = e * pl.reciprocal(jnp.sum(e, axis=-1, keepdims=True), approx=True)
            ctx = jnp.dot(pnorm.astype(v.dtype), v, preferred_element_type=jnp.float32)
            outs.append(ctx.astype(o_ref.dtype))       # bf16 immediately, bounded live range
        o_ref[0, :, lo:lo + 2 * HEAD_DIM] = jnp.concatenate(outs, axis=-1)  # 128-lane store


def attention_pallas(qkv, mask_bias):
    B, S, _ = qkv.shape
    return pl.pallas_call(
        _attention_kernel,
        out_shape=jax.ShapeDtypeStruct((B, S, HIDDEN), jnp.bfloat16),
        grid_spec=pltpu.PrefetchScalarGridSpec(
            num_scalar_prefetch=0,
            grid=(B, GROUPS),                           # >=2 parallel blocks per batch elem
            in_specs=[
                pl.BlockSpec((1, S, QKV_GROUP), lambda b, g: (b, 0, g)),
                pl.BlockSpec((1, S), lambda b, g: (b, 0)),
            ],
            out_specs=pl.BlockSpec((1, S, GROUP_WIDTH), lambda b, g: (b, 0, g)),
        ),
        compiler_params=pltpu.CompilerParams(
            dimension_semantics=("parallel", "parallel"),
            vmem_limit_bytes=VMEM_LIMIT),
    )(qkv, mask_bias)


# ----------------------------------------------------------------------------
# Kernel 4: standalone layernorm (embedding output only), row-tiled.
# ----------------------------------------------------------------------------
def _layernorm_kernel(x_ref, g_ref, b_ref, o_ref):
    x = x_ref[...].astype(jnp.float32)
    mean = jnp.mean(x, axis=-1, keepdims=True)
    xc = x - mean
    var = jnp.mean(xc * xc, axis=-1, keepdims=True)
    inv = jax.lax.rsqrt(var + 1e-12)
    o_ref[...] = (xc * inv * g_ref[...] + b_ref[...]).astype(o_ref.dtype)


def layernorm_pallas(x, gamma, beta):
    M, H = x.shape
    tm = _pick_row_tile(M)
    return pl.pallas_call(
        _layernorm_kernel,
        out_shape=jax.ShapeDtypeStruct((M, H), jnp.bfloat16),
        grid_spec=pltpu.PrefetchScalarGridSpec(
            num_scalar_prefetch=0,
            grid=(M // tm,),
            in_specs=[pl.BlockSpec((tm, H), lambda i: (i, 0)),
                      pl.BlockSpec((1, H), lambda i: (0, 0)),
                      pl.BlockSpec((1, H), lambda i: (0, 0))],
            out_specs=pl.BlockSpec((tm, H), lambda i: (i, 0)),
        ),
        compiler_params=pltpu.CompilerParams(
            dimension_semantics=("parallel",),
            vmem_limit_bytes=VMEM_LIMIT),
    )(x, gamma.reshape(1, H), beta.reshape(1, H))


# ----------------------------------------------------------------------------
# Parameters & forward pass (glue in plain JAX, hot paths in the kernels above).
# ----------------------------------------------------------------------------
def _fuse_qkv(wq, wk, wv, bq, bk, bv):
    """Head-group-major fused QKV: [Q_g | K_g | V_g] per group (1152 cols each),
    with the softmax scale folded into the Q projection (literally free)."""
    scale = 1.0 / math.sqrt(HEAD_DIM)
    wq = wq * scale
    bq = bq * scale
    w_parts, b_parts = [], []
    for g in range(GROUPS):
        sl = slice(g * GROUP_WIDTH, (g + 1) * GROUP_WIDTH)
        w_parts += [wq[:, sl], wk[:, sl], wv[:, sl]]
        b_parts += [bq[sl], bk[sl], bv[sl]]
    return jnp.concatenate(w_parts, axis=1).astype(jnp.bfloat16), jnp.concatenate(b_parts)


def init_params(key):
    def normal(k, shape, dtype=jnp.bfloat16):
        return (0.02 * jax.random.normal(k, shape, dtype=jnp.float32)).astype(dtype)

    keys = jax.random.split(key, 4 + LAYERS)
    params = {
        "word_emb": normal(keys[0], (VOCAB, HIDDEN)),
        "pos_emb": normal(keys[1], (MAX_POS, HIDDEN)),
        "type_emb": normal(keys[2], (2, HIDDEN)),
        "emb_ln_g": jnp.ones((HIDDEN,), jnp.float32),
        "emb_ln_b": jnp.zeros((HIDDEN,), jnp.float32),
        "layers": [],
    }
    for l in range(LAYERS):
        lk = jax.random.split(keys[4 + l], 6)
        wq = normal(lk[0], (HIDDEN, HIDDEN), jnp.float32)
        wk = normal(lk[1], (HIDDEN, HIDDEN), jnp.float32)
        wv = normal(lk[2], (HIDDEN, HIDDEN), jnp.float32)
        zero_h = jnp.zeros((HIDDEN,), jnp.float32)
        w_qkv, b_qkv = _fuse_qkv(wq, wk, wv, zero_h, zero_h, zero_h)
        params["layers"].append({
            "w_qkv": w_qkv,                                   # (768, 2304) head-group-major
            "b_qkv": b_qkv,
            "wo": normal(lk[3], (HIDDEN, HIDDEN)),
            "bo": jnp.zeros((HIDDEN,), jnp.float32),
            "ln1_g": jnp.ones((HIDDEN,), jnp.float32),
            "ln1_b": jnp.zeros((HIDDEN,), jnp.float32),
            "w_ffn1": normal(lk[4], (HIDDEN, FFN)),
            "b_ffn1": jnp.zeros((FFN,), jnp.float32),
            "w_ffn2": normal(lk[5], (FFN, HIDDEN)),
            "b_ffn2": jnp.zeros((HIDDEN,), jnp.float32),
            "ln2_g": jnp.ones((HIDDEN,), jnp.float32),
            "ln2_b": jnp.zeros((HIDDEN,), jnp.float32),
        })
    cls_k, _ = jax.random.split(keys[3], 2)
    params["cls_w"] = 0.02 * jax.random.normal(cls_k, (HIDDEN, 1), dtype=jnp.float32)
    params["cls_b"] = jnp.zeros((1,), jnp.float32)
    return params


def bert_encoder_forward(params, seq, attn_masks):
    B, S = seq.shape
    # embedding lookups stay in plain JAX (gather glue), bf16 tables
    word = jnp.take(params["word_emb"], seq, axis=0)                  # (B, S, H)
    pos = params["pos_emb"][:S][None, :, :]                           # (1, S, H)
    typ = params["type_emb"][0][None, None, :]                        # token_type_ids == 0
    x = (word + pos + typ).reshape(B * S, HIDDEN)
    x = layernorm_pallas(x, params["emb_ln_g"], params["emb_ln_b"])

    # additive attention-mask bias, computed once (shared by every layer / head)
    mask_bias = (1.0 - attn_masks.astype(jnp.float32)) * (-10000.0)   # (B, S)

    for layer in params["layers"]:
        qkv = linear_pallas(x, layer["w_qkv"], layer["b_qkv"])        # (B*S, 2304)
        ctx = attention_pallas(qkv.reshape(B, S, 3 * HIDDEN), mask_bias)
        # wo projection with residual + LN fused in the epilogue
        x = linear_residual_ln_pallas(ctx.reshape(B * S, HIDDEN), layer["wo"],
                                      layer["bo"], x, layer["ln1_g"], layer["ln1_b"])
        h = linear_pallas(x, layer["w_ffn1"], layer["b_ffn1"], activation="gelu")
        # FFN down-projection with residual + LN fused in the epilogue
        x = linear_residual_ln_pallas(h, layer["w_ffn2"], layer["b_ffn2"],
                                      x, layer["ln2_g"], layer["ln2_b"])

    return x.reshape(B, S, HIDDEN)                                    # last_hidden_state


def sentiment_classifier_forward(params, seq, attn_masks):
    hidden = bert_encoder_forward(params, seq, attn_masks)            # (B, S, 768) bf16
    cls_tok = hidden[:, 0, :].astype(jnp.float32)                     # out[:, 0, :]
    # 768 -> 1 head stays in plain JAX: a Pallas matmul with a 1-wide lane output
    # would force masked partial stores and an almost-empty MXU pass.
    logits = cls_tok @ params["cls_w"] + params["cls_b"]              # (B, 1) f32
    return logits


if __name__ == "__main__":
    key = jax.random.PRNGKey(0)
    pkey, skey = jax.random.split(key)
    params = init_params(pkey)

    B, S = 2, 8
    seq = jax.random.randint(skey, (B, S), 0, VOCAB, dtype=jnp.int32)
    attn_masks = jnp.ones((B, S), dtype=jnp.int32)

    logits = sentiment_classifier_forward(params, seq, attn_masks)
    jax.block_until_ready(logits)
    assert logits.shape == (B, 1) and logits.dtype == jnp.float32
    print("KERNEL_OK")
</pallas_src>

<mosaic_0001>
module attributes {stable_mosaic.version = 11 : i64} {
  func.func @_layernorm_kernel(%arg0: i32, %arg1: memref<16x768xbf16, #tpu.memory_space<vmem>>, %arg2: memref<1x768xf32, #tpu.memory_space<vmem>>, %arg3: memref<1x768xf32, #tpu.memory_space<vmem>>, %arg4: memref<16x768xbf16, #tpu.memory_space<vmem>>) attributes {dimension_semantics = [#tpu.dimension_semantics<parallel>], iteration_bounds = array<i64: 1>, scalar_prefetch = 0 : i64, scratch_operands = 0 : i64, tpu.core_type = #tpu.core_type<tc>, window_params = [{transform_indices = @transform_0, window_bounds = array<i64: 16, 768>}, {pipeline_mode = #tpu.pipeline_mode<synchronous>, transform_indices = @transform_1, window_bounds = array<i64: 1, 768>}, {pipeline_mode = #tpu.pipeline_mode<synchronous>, transform_indices = @transform_2, window_bounds = array<i64: 1, 768>}, {transform_indices = @transform_3, window_bounds = array<i64: 16, 768>}]} {
    %c0 = arith.constant 0 : index
    %c0_0 = arith.constant 0 : index
    %0 = vector.load %arg1[%c0, %c0_0] : memref<16x768xbf16, #tpu.memory_space<vmem>>, vector<16x768xbf16>
    %1 = arith.extf %0 : vector<16x768xbf16> to vector<16x768xf32>
    %cst = arith.constant dense<0.000000e+00> : vector<16xf32>
    %2 = vector.multi_reduction <add>, %1, %cst [1] : vector<16x768xf32> to vector<16xf32>
    %3 = vector.shape_cast %2 : vector<16xf32> to vector<16x1xf32>
    %cst_1 = arith.constant 7.680000e+02 : f32
    %4 = vector.broadcast %cst_1 : f32 to vector<16x1xf32>
    %5 = arith.divf %3, %4 : vector<16x1xf32>
    %6 = vector.broadcast %5 : vector<16x1xf32> to vector<16x768xf32>
    %7 = arith.subf %1, %6 : vector<16x768xf32>
    %8 = arith.mulf %7, %7 : vector<16x768xf32>
    %cst_2 = arith.constant dense<0.000000e+00> : vector<16xf32>
    %9 = vector.multi_reduction <add>, %8, %cst_2 [1] : vector<16x768xf32> to vector<16xf32>
    %10 = vector.shape_cast %9 : vector<16xf32> to vector<16x1xf32>
    %cst_3 = arith.constant 7.680000e+02 : f32
    %11 = vector.broadcast %cst_3 : f32 to vector<16x1xf32>
    %12 = arith.divf %10, %11 : vector<16x1xf32>
    %cst_4 = arith.constant 9.99999996E-13 : f32
    %13 = vector.broadcast %cst_4 : f32 to vector<16x1xf32>
    %14 = arith.addf %12, %13 : vector<16x1xf32>
    %15 = math.rsqrt %14 : vector<16x1xf32>
    %16 = vector.broadcast %15 : vector<16x1xf32> to vector<16x768xf32>
    %17 = arith.mulf %7, %16 : vector<16x768xf32>
    %c0_5 = arith.constant 0 : index
    %c0_6 = arith.constant 0 : index
    %18 = vector.load %arg2[%c0_5, %c0_6] : memref<1x768xf32, #tpu.memory_space<vmem>>, vector<1x768xf32>
    %19 = vector.broadcast %18 : vector<1x768xf32> to vector<16x768xf32>
    %20 = arith.mulf %17, %19 : vector<16x768xf32>
    %c0_7 = arith.constant 0 : index
    %c0_8 = arith.constant 0 : index
    %21 = vector.load %arg3[%c0_7, %c0_8] : memref<1x768xf32, #tpu.memory_space<vmem>>, vector<1x768xf32>
    %22 = vector.broadcast %21 : vector<1x768xf32> to vector<16x768xf32>
    %23 = arith.addf %20, %22 : vector<16x768xf32>
    %24 = arith.truncf %23 : vector<16x768xf32> to vector<16x768xbf16>
    %c0_9 = arith.constant 0 : index
    %c0_10 = arith.constant 0 : index
    %25 = vector.load %arg4[%c0_9, %c0_10] : memref<16x768xbf16, #tpu.memory_space<vmem>>, vector<16x768xbf16>
    tpu.vector_store %arg4[%c0_9, %c0_10], %24 {strides = array<i32>} : memref<16x768xbf16, #tpu.memory_space<vmem>>, vector<16x768xbf16>,
    return
  }
  func.func @transform_0(%arg0: i32) -> (i32, i32) {
    %c0_i32 = arith.constant 0 : i32
    %c0_i32_0 = arith.constant 0 : i32
    return %arg0, %c0_i32 : i32, i32
  }
  func.func @transform_1(%arg0: i32) -> (i32, i32) {
    %c0_i32 = arith.constant 0 : i32
    %c0_i32_0 = arith.constant 0 : i32
    %c0_i32_1 = arith.constant 0 : i32
    return %c0_i32, %c0_i32_0 : i32, i32
  }
  func.func @transform_2(%arg0: i32) -> (i32, i32) {
    %c0_i32 = arith.constant 0 : i32
    %c0_i32_0 = arith.constant 0 : i32
    %c0_i32_1 = arith.constant 0 : i32
    return %c0_i32, %c0_i32_0 : i32, i32
  }
  func.func @transform_3(%arg0: i32) -> (i32, i32) {
    %c0_i32 = arith.constant 0 : i32
    %c0_i32_0 = arith.constant 0 : i32
    return %arg0, %c0_i32 : i32, i32
  }
}

</mosaic_0001>

<bundles_post_ra>
// kernel: tpu_custom_call.1
= control target key start
LH: loop header
LB: loop body
LE: loop exit
PB: predicated region body
PF: predicated region fallthrough
CT: control target
= control target key end

     0   :  { %8 = vsyncpa [#allocation3], 0  ;;  %s488_s0 = inlined_call_operand.hbm [shape: bf16[16,768], index: 0, kind: input, shape index: {}]   ;;  %s489_s1 = inlined_call_operand.hbm [shape: f32[1,768], index: 1, kind: input, shape index: {}]   ;;  %s490_s2 = inlined_call_operand.vmem [shape: f32[1,768], index: 2, kind: input, shape index: {}]   ;;  %s491_s3 = inlined_call_operand.hbm [shape: bf16[16,768], index: 3, kind: output, shape index: {}]  }
   0x1   :  { %9 = vsyncpa [#allocation6], 0 }
   0x2   :  { %10 = vsyncpa [#allocation4], 0  ;;  %s373_s12 = smov [#allocation2]   ;;  %s301_s16 = scalar_lea.hbm %s488_s0, 768 }
   0x3   :  { %s16_s13 = sshll.u32 %s373_s12, 4  ;;  %p302_p0 = scmp.ne.s32.totalorder %s488_s0, %s301_s16  ;;  %s17_s13 = int_to_ptr.vmem [resolvable:$true] %s16_s13 }
   0x4   :  { %p305_p1 = scmp.lt.u32.totalorder %s301_s16, %s488_s0 }
   0x6   :  { %p307_p2 = pnand %p305_p1, %p302_p0 }
   0x8   :  { %310 = shalt.err (!%p307_p2)
}
   0x9   :  { %s311_s21 = scalar_lea.vmem %s17_s13, 768  ;;  %p316_p4 = scmp.lt.s32.totalorder %s17_s13, %s17_s13 }
   0xa   :  { %p312_p3 = scmp.ne.s32.totalorder %s17_s13, %s311_s21  ;;  %p317_p5 = scmp.lt.s32.totalorder %s311_s21, %s311_s21 }
   0xc   :  { %p318_p6 = por %p317_p5, %p316_p4 }
   0xe   :  { %p319_p7 = pnand %p318_p6, %p312_p3 }
  0x10   :  { %322 = shalt.err (!%p319_p7)
}
  0x11   :  { %s374_s22 = smov 384   ;;  %s375_s23 = smov 24  }
  0x12   :  { %22 = dma.hbm_to_vmem [thread:$0]  %s488_s0, 768, %s17_s13, [#allocation3], %s374_s22, %s374_s22, %s375_s23  }
  0x13   :  { %s376_s26 = smov [#allocation5]   ;;  %s323_s30 = scalar_lea.hbm %s489_s1, 96 }
  0x14   :  { %s29_s27 = sshll.u32 %s376_s26, 4  ;;  %p324_p8 = scmp.ne.s32.totalorder %s489_s1, %s323_s30  ;;  %s30_s27 = int_to_ptr.vmem [resolvable:$true] %s29_s27 }
  0x15   :  { %p327_p9 = scmp.lt.u32.totalorder %s323_s30, %s489_s1 }
  0x17   :  { %p329_p10 = pnand %p327_p9, %p324_p8 }
  0x19   :  { %332 = shalt.err (!%p329_p10)
}
  0x1a   :  { %s333_s8 = scalar_lea.vmem %s30_s27, 96  ;;  %p338_p12 = scmp.lt.s32.totalorder %s30_s27, %s30_s27 }
  0x1b   :  { %p334_p11 = scmp.ne.s32.totalorder %s30_s27, %s333_s8  ;;  %p339_p13 = scmp.lt.s32.totalorder %s333_s8, %s333_s8 }
  0x1d   :  { %p340_p0 = por %p339_p13, %p338_p12 }
  0x1f   :  { %p341_p1 = pnand %p340_p0, %p334_p11 }
  0x21   :  { %344 = shalt.err (!%p341_p1)
}
  0x22   :  { %32 = dma.hbm_to_vmem [thread:$0]  %s489_s1, 96, %s30_s27, [#allocation6]  }
  0x23   :  { %367 = dma.done.wait [#allocation3], 768  }
  0x24   :  { %368 = vsyncadd [#allocation3], 4294966528 }
  0x25   :  { %369 = dma.done.wait [#allocation6], 96  }
  0x26   :  { %370 = vsyncadd [#allocation6], 4294967200  ;;  %v41_v0 = vld [vmem:[#allocation2] sm:$0xff]  ;;  %v42_v1 = vld [vmem:[#allocation2 + $0x8] sm:$0xff] }
  0x27   :  { %v47_v2 = vunpack.c.l.bf16 %v41_v0  ;;  %v48_v3 = vunpack.c.h.bf16 %v41_v0  ;;  %v49_v4 = vunpack.c.l.bf16 %v42_v1  ;;  %v44_v5 = vld [vmem:[#allocation2 + $0x18] sm:$0xff]  ;;  %v45_v6 = vld [vmem:[#allocation2 + $0x20] sm:$0xff]  ;;  %v43_v7 = vld [vmem:[#allocation2 + $0x10] sm:$0xff]  ;;  %v50_v10 = vunpack.c.h.bf16 %v42_v1 }
  0x28   :  { %v53_v8 = vunpack.c.l.bf16 %v44_v5  ;;  %v54_v9 = vunpack.c.h.bf16 %v44_v5  ;;  %v46_v12 = vld [vmem:[#allocation2 + $0x28] sm:$0xff]  ;;  %v55_v13 = vunpack.c.l.bf16 %v45_v6  ;;  %v56_v14 = vunpack.c.h.bf16 %v45_v6 }
  0x29   :  { %v59_v11 = vadd.f32 %v48_v3, %v47_v2  ;;  %v51_v16 = vunpack.c.l.bf16 %v43_v7  ;;  %v57_v18 = vunpack.c.l.bf16 %v46_v12  ;;  %v52_v20 = vunpack.c.h.bf16 %v43_v7 }
  0x2a   :  { %v66_v15 = vadd.f32 %v54_v9, %v53_v8  ;;  %v58_v24 = vunpack.c.h.bf16 %v46_v12 }
  0x2b   :  { %v60_v17 = vadd.f32 %v59_v11, %v49_v4 }
  0x2c   :  { %v67_v19 = vadd.f32 %v66_v15, %v55_v13 }
  0x2d   :  { %v61_v21 = vadd.f32 %v60_v17, %v50_v10  ;;  %v176_v17 = vld [vmem:[%s490_s2] sm:$0x3f]  ;;  %s377_s2 = smov [#allocation7]  }
  0x2e   :  { %v68_v22 = vadd.f32 %v67_v19, %v56_v14  ;;  %s267_s11 = sshll.u32 %s377_s2, 4  ;;  %s268_s11 = int_to_ptr.vmem [resolvable:$true] %s267_s11 }
  0x2f   :  { %v62_v23 = vadd.f32 %v61_v21, %v51_v16  ;;  %s345_s12 = scalar_lea.vmem %s268_s11, 768  ;;  %p350_p3 = scmp.lt.s32.totalorder %s268_s11, %s268_s11 }
  0x30   :  { %v69_v25 = vadd.f32 %v68_v22, %v57_v18  ;;  %p346_p2 = scmp.ne.s32.totalorder %s268_s11, %s345_s12  ;;  %p351_p4 = scmp.lt.s32.totalorder %s345_s12, %s345_s12 }
  0x31   :  { %v63_v26 = vadd.f32 %v62_v23, %v52_v20 }
  0x32   :  { %v70_v27 = vadd.f32 %v69_v25, %v58_v24  ;;  %p352_p5 = por %p351_p4, %p350_p3 }
  0x33   :  { %64 = vadd.xlane.f32.xlu0 %v63_v26 }
  0x34   :  { %p353_p6 = pnand %p352_p5, %p346_p2 }
  0x37   :  { %71 = vadd.xlane.f32.xlu0 %v70_v27 }
  0xc0   :  { %v65_v28 = vpop.xlane.xlu0 %64 }
  0xc1   :  { %v74_v29 = vmul.f32 0.0013020834, %v65_v28 }
  0xc3   :  { %v425_v30 = vsub.f32 %v47_v2, %v74_v29  ;;  %v427_v31 = vsub.f32 %v48_v3, %v74_v29  ;;  %v429_v32 = vsub.f32 %v49_v4, %v74_v29  ;;  %v431_v34 = vsub.f32 %v50_v10, %v74_v29 }
  0xc4   :  { %v72_v33 = vpop.xlane.xlu0 %71  ;;  %v80_v38 = vsub.f32 %v51_v16, %v74_v29  ;;  %v81_v44 = vsub.f32 %v52_v20, %v74_v29  ;;  %v134_v4 = vlaneseq }
  0xc5   :  { %v75_v35 = vmul.f32 0.0013020834, %v72_v33  ;;  %v88_v36 = vmul.f32 %v425_v30, %v425_v30  ;;  %v89_v37 = vmul.f32 %v427_v31, %v427_v31  ;;  %v90_v39 = vmul.f32 %v429_v32, %v429_v32 }
  0xc6   :  { %v91_v45 = vmul.f32 %v431_v34, %v431_v34  ;;  %v92_v50 = vmul.f32 %v80_v38, %v80_v38  ;;  %v93_v55 = vmul.f32 %v81_v44, %v81_v44 }
  0xc7   :  { %v100_v40 = vadd.f32 %v89_v37, %v88_v36  ;;  %v439_v41 = vsub.f32 %v53_v8, %v75_v35  ;;  %v441_v42 = vsub.f32 %v54_v9, %v75_v35  ;;  %v443_v43 = vsub.f32 %v55_v13, %v75_v35 }
  0xc8   :  { %v447_v47 = vsub.f32 %v56_v14, %v75_v35  ;;  %v453_v52 = vsub.f32 %v57_v18, %v75_v35  ;;  %v87_v57 = vsub.f32 %v58_v24, %v75_v35  ;;  %v135_v8 = vshrl.u32 %v134_v4, 7  ;;  %v132_v14 = vld [vmem:[#allocation5] sm:$0x3f] }
  0xc9   :  { %v101_v46 = vadd.f32 %v100_v40, %v90_v39  ;;  %v94_v48 = vmul.f32 %v439_v41, %v439_v41  ;;  %v95_v49 = vmul.f32 %v441_v42, %v441_v42  ;;  %v96_v53 = vmul.f32 %v443_v43, %v443_v43 }
  0xca   :  { %v97_v58 = vmul.f32 %v447_v47, %v447_v47  ;;  %v98_v61 = vmul.f32 %v453_v52, %v453_v52  ;;  %v99_v63 = vmul.f32 %v87_v57, %v87_v57  ;;  %v136_v10 = vsub.s32 0, %v135_v8 }
  0xcb   :  { %v102_v51 = vadd.f32 %v101_v46, %v91_v45  ;;  %v107_v54 = vadd.f32 %v95_v49, %v94_v48  ;;  %v140_v11 = vsub.s32 1, %v135_v8  ;;  %v144_v12 = vsub.s32 2, %v135_v8 }
  0xcc   :  { %v148_v13 = vsub.s32 3, %v135_v8  ;;  %v152_v15 = vsub.s32 4, %v135_v8  ;;  %v156_v16 = vsub.s32 5, %v135_v8  ;;  %v137_v18 = vrot.slane %v132_v14, %v136_v10 }
  0xcd   :  { %v103_v56 = vadd.f32 %v102_v51, %v92_v50  ;;  %v108_v59 = vadd.f32 %v107_v54, %v96_v53  ;;  %v141_v19 = vrot.slane %v132_v14, %v140_v11  ;;  %v145_v20 = vrot.slane %v132_v14, %v144_v12 }
  0xce   :  { %v149_v21 = vrot.slane %v132_v14, %v148_v13  ;;  %v153_v23 = vrot.slane %v132_v14, %v152_v15  ;;  %v157_v24 = vrot.slane %v132_v14, %v156_v16  ;;  %v181_v25 = vrot.slane %v176_v17, %v136_v10 }
  0xcf   :  { %v104_v60 = vadd.f32 %v103_v56, %v93_v55  ;;  %v109_v62 = vadd.f32 %v108_v59, %v97_v58  ;;  %v185_v26 = vrot.slane %v176_v17, %v140_v11  ;;  %v189_v37 = vrot.slane %v176_v17, %v144_v12 }
  0xd0   :  { %v193_v39 = vrot.slane %v176_v17, %v148_v13  ;;  %v197_v46 = vrot.slane %v176_v17, %v152_v15  ;;  %v201_v48 = vrot.slane %v176_v17, %v156_v16 }
  0xd1   :  { %105 = vadd.xlane.f32.xlu1 %v104_v60  ;;  %v110_v0 = vadd.f32 %v109_v62, %v98_v61 }
  0xd3   :  { %v111_v1 = vadd.f32 %v110_v0, %v99_v63 }
  0xd5   :  { %112 = vadd.xlane.f32.xlu1 %v111_v1 }
 0x15e   :  { %v106_v2 = vpop.xlane.xlu1 %105 }
 0x15f   :  { %v114_v3 = vmul.f32 0.0013020834, %v106_v2 }
 0x161   :  { %v116_v5 = vadd.f32 1e-12, %v114_v3 }
 0x162   :  { %v113_v6 = vpop.xlane.xlu1 %112 }
 0x163   :  { %297 = vrsqrt.f32 %v116_v5  ;;  %v115_v7 = vmul.f32 0.0013020834, %v113_v6 }
 0x165   :  { %v117_v9 = vadd.f32 1e-12, %v115_v7 }
 0x167   :  { %299 = vrsqrt.f32 %v117_v9 }
 0x16d   :  { %v298_v22 = vpop.eup %297 }
 0x16e   :  { %v120_v27 = vmul.f32 %v298_v22, %v425_v30  ;;  %v121_v28 = vmul.f32 %v298_v22, %v427_v31  ;;  %v122_v29 = vmul.f32 %v298_v22, %v429_v32  ;;  %v123_v33 = vmul.f32 %v298_v22, %v431_v34 }
 0x16f   :  { %v124_v35 = vmul.f32 %v298_v22, %v80_v38  ;;  %v125_v36 = vmul.f32 %v298_v22, %v81_v44 }
 0x170   :  { %v164_v40 = vmul.f32 %v137_v18, %v120_v27  ;;  %v165_v45 = vmul.f32 %v141_v19, %v121_v28  ;;  %v166_v50 = vmul.f32 %v145_v20, %v122_v29  ;;  %v167_v51 = vmul.f32 %v149_v21, %v123_v33 }
 0x171   :  { %v300_v49 = vpop.eup %299  ;;  %v168_v53 = vmul.f32 %v153_v23, %v124_v35  ;;  %v169_v54 = vmul.f32 %v157_v24, %v125_v36 }
 0x172   :  { %v126_v30 = vmul.f32 %v300_v49, %v439_v41  ;;  %v127_v31 = vmul.f32 %v300_v49, %v441_v42  ;;  %v128_v32 = vmul.f32 %v300_v49, %v443_v43  ;;  %v129_v34 = vmul.f32 %v300_v49, %v447_v47 }
 0x173   :  { %v130_v38 = vmul.f32 %v300_v49, %v453_v52  ;;  %v131_v44 = vmul.f32 %v300_v49, %v87_v57  ;;  %v208_v55 = vadd.f32 %v181_v25, %v164_v40  ;;  %v209_v56 = vadd.f32 %v185_v26, %v165_v45 }
 0x174   :  { %v170_v58 = vmul.f32 %v137_v18, %v126_v30  ;;  %v171_v59 = vmul.f32 %v141_v19, %v127_v31  ;;  %v172_v60 = vmul.f32 %v145_v20, %v128_v32  ;;  %v173_v61 = vmul.f32 %v149_v21, %v129_v34 }
 0x175   :  { %v174_v62 = vmul.f32 %v153_v23, %v130_v38  ;;  %v175_v63 = vmul.f32 %v157_v24, %v131_v44  ;;  %v210_v0 = vadd.f32 %v189_v37, %v166_v50  ;;  %v211_v1 = vadd.f32 %v193_v39, %v167_v51 }
 0x176   :  { %v212_v41 = vadd.f32 %v197_v46, %v168_v53  ;;  %v213_v2 = vadd.f32 %v201_v48, %v169_v54  ;;  %v214_v42 = vadd.f32 %v181_v25, %v170_v58  ;;  %v215_v3 = vadd.f32 %v185_v26, %v171_v59 }
 0x177   :  { %v216_v43 = vadd.f32 %v189_v37, %v172_v60  ;;  %v217_v47 = vadd.f32 %v193_v39, %v173_v61  ;;  %v218_v52 = vadd.f32 %v197_v46, %v174_v62  ;;  %v219_v57 = vadd.f32 %v201_v48, %v175_v63 }
 0x178   :  { %v286_v4 = vpack.c.bf16 %v209_v56, %v208_v55  ;;  %v287_v5 = vpack.c.bf16 %v211_v1, %v210_v0  ;;  %v288_v6 = vpack.c.bf16 %v213_v2, %v212_v41  ;;  %v289_v7 = vpack.c.bf16 %v215_v3, %v214_v42 }
 0x179   :  { %v290_v8 = vpack.c.bf16 %v217_v47, %v216_v43  ;;  %v291_v9 = vpack.c.bf16 %v219_v57, %v218_v52 }
 0x17a   :  { %256 = vst [vmem:[#allocation7] sm:$0xff] %v286_v4  ;;  %257 = vst [vmem:[#allocation7 + $0x8] sm:$0xff] %v287_v5 }
 0x17b   :  { %258 = vst [vmem:[#allocation7 + $0x10] sm:$0xff] %v288_v6  ;;  %259 = vst [vmem:[#allocation7 + $0x18] sm:$0xff] %v289_v7 }
 0x17c   :  { %260 = vst [vmem:[#allocation7 + $0x20] sm:$0xff] %v290_v8  ;;  %261 = vst [vmem:[#allocation7 + $0x28] sm:$0xff] %v291_v9 }
 0x17d   :  { %356 = shalt.err (!%p353_p6)
}
 0x17e   :  { %s357_s15 = scalar_lea.hbm %s491_s3, 768 }
 0x17f   :  { %p358_p7 = scmp.ne.s32.totalorder %s491_s3, %s357_s15  ;;  %p361_p8 = scmp.lt.u32.totalorder %s357_s15, %s491_s3 }
 0x181   :  { %p363_p9 = pnand %p361_p8, %p358_p7 }
 0x183   :  { %366 = shalt.err (!%p363_p9)
}
 0x184   :  { %273 = dma.vmem_to_hbm [thread:$0]  %s268_s11, 768, %s491_s3, [#allocation4], %s374_s22, %s374_s22, %s375_s23  }
 0x185   :  { %371 = dma.done.wait [#allocation4], 768  }
 0x186   :  { %372 = vsyncadd [#allocation4], 4294966528 }
 0x187   :  { %277 = vsyncpa [#allocation3], 1 }
 0x188   :  { %278 = vsyncpa [#allocation6], 1 }
 0x189   :  { %279 = vsyncpa [#allocation4], 1 }

</bundles_post_ra>
